<compile_context>
chip_gen: v6e
topology: v6e:2x2x1
jax: 0.10.0
libtpu: 0.0.40
codegen_flags: <defaults>
</compile_context>

<pallas_src>
import functools

import jax
import jax.numpy as jnp
from jax.experimental import pallas as pl
from jax.experimental.pallas import tpu as pltpu

_EPS = 1e-5


def _ln_withbias_kernel(x_ref, w_ref, b_ref, o_ref):
    x = x_ref[...].astype(jnp.float32)                  # (1, C, T)
    mu = jnp.mean(x, axis=1, keepdims=True)             # (1, 1, T)
    xc = x - mu
    var = jnp.mean(xc * xc, axis=1, keepdims=True)      # unbiased=False
    y = xc * jax.lax.rsqrt(var + _EPS)
    w = w_ref[...].astype(jnp.float32)                  # (1, C, 1)
    b = b_ref[...].astype(jnp.float32)
    o_ref[...] = (y * w + b).astype(o_ref.dtype)


def _ln_biasfree_kernel(x_ref, w_ref, o_ref):
    x = x_ref[...].astype(jnp.float32)                  # (1, C, T)
    mu = jnp.mean(x, axis=1, keepdims=True)
    xc = x - mu
    var = jnp.mean(xc * xc, axis=1, keepdims=True)      # var about the mean
    # BiasFree variant: x (not x - mu) is scaled by rsqrt(var + eps).
    y = x * jax.lax.rsqrt(var + _EPS)
    o_ref[...] = (y * w_ref[...].astype(jnp.float32)).astype(o_ref.dtype)


def _pick_tile(c, hw, itemsize):
    """Pixels per block: ~1 MiB of VMEM incl. sublane padding of C; /128."""
    sub = 16 if itemsize == 2 else 8
    padded_c = ((c + sub - 1) // sub) * sub
    target = (1024 * 1024) // max(1, padded_c * itemsize)
    t = max(128, (target // 128) * 128)
    return hw if t >= hw else t


@functools.partial(jax.jit, static_argnames=("layernorm_type", "tile"))
def layernorm(x, weight, bias=None, layernorm_type="WithBias", tile=None):
    """x: (b, c, h, w) NCHW; weight/bias: (c,). Returns NCHW, same dtype."""
    b, c, h, w = x.shape
    hw = h * w
    t = tile if tile is not None else _pick_tile(
        c, hw, jnp.dtype(x.dtype).itemsize)
    grid = (b, pl.cdiv(hw, t))

    x3 = x.reshape(b, c, hw)                     # free reshape for NCHW
    w3 = weight.reshape(1, c, 1)

    x_spec = pl.BlockSpec((1, c, t), lambda bi, ti: (bi, 0, ti))
    p_spec = pl.BlockSpec((1, c, 1), lambda bi, ti: (0, 0, 0))
    out_spec = pl.BlockSpec((1, c, t), lambda bi, ti: (bi, 0, ti))
    out_shape = jax.ShapeDtypeStruct((b, c, hw), x.dtype)
    cparams = pltpu.CompilerParams(
        dimension_semantics=("parallel", "parallel"),
        vmem_limit_bytes=32 * 1024 * 1024)

    if layernorm_type == "BiasFree":
        out3 = pl.pallas_call(
            _ln_biasfree_kernel,
            out_shape=out_shape,
            grid_spec=pltpu.PrefetchScalarGridSpec(
                num_scalar_prefetch=0,
                grid=grid,
                in_specs=[x_spec, p_spec],
                out_specs=out_spec),
            compiler_params=cparams,
        )(x3, w3)
    else:
        b3 = bias.reshape(1, c, 1)
        out3 = pl.pallas_call(
            _ln_withbias_kernel,
            out_shape=out_shape,
            grid_spec=pltpu.PrefetchScalarGridSpec(
                num_scalar_prefetch=0,
                grid=grid,
                in_specs=[x_spec, p_spec, p_spec],
                out_specs=out_spec),
            compiler_params=cparams,
        )(x3, w3, b3)

    return out3.reshape(b, c, h, w)


def _reference(x, weight, bias, layernorm_type):
    # Mathematically identical to: to_3d -> LayerNorm over last dim -> to_4d.
    xf = x.astype(jnp.float32)
    mu = jnp.mean(xf, axis=1, keepdims=True)
    var = jnp.mean((xf - mu) ** 2, axis=1, keepdims=True)
    wb = weight.reshape(1, -1, 1, 1).astype(jnp.float32)
    if layernorm_type == "BiasFree":
        y = xf * jax.lax.rsqrt(var + _EPS) * wb
    else:
        y = (xf - mu) * jax.lax.rsqrt(var + _EPS) * wb \
            + bias.reshape(1, -1, 1, 1).astype(jnp.float32)
    return y.astype(x.dtype)


if __name__ == "__main__":
    key = jax.random.PRNGKey(0)
    ok = True

    # (shape, forced tile).  The second case forces tile=128 on h*w=480 so the
    # masked ragged last block along the pixel axis is exercised.
    cases = [((2, 4, 16, 16), None), ((1, 8, 20, 24), 128)]
    for (bs, cs, hs, ws), tile in cases:
        kx, kw, kb = jax.random.split(jax.random.fold_in(key, bs * hs), 3)
        x = jax.random.normal(kx, (bs, cs, hs, ws), dtype=jnp.float32)
        weight = 1.0 + 0.1 * jax.random.normal(kw, (cs,), dtype=jnp.float32)
        bias = 0.1 * jax.random.normal(kb, (cs,), dtype=jnp.float32)

        for ln_type in ("WithBias", "BiasFree"):
            out = layernorm(x, weight, bias, layernorm_type=ln_type, tile=tile)
            out = jax.block_until_ready(out)
            ref = _reference(x, weight, bias, ln_type)
            if not jnp.allclose(out, ref, atol=1e-4, rtol=1e-4):
                ok = False
                print(f"MISMATCH {ln_type} shape={(bs, cs, hs, ws)} tile={tile}"
                      f": max err {float(jnp.max(jnp.abs(out - ref)))}")

    if ok:
        print("KERNEL_OK")
</pallas_src>

<mosaic_0001>
module attributes {stable_mosaic.version = 11 : i64} {
  func.func @_ln_withbias_kernel(%arg0: i32, %arg1: i32, %arg2: memref<1x4x256xf32, #tpu.memory_space<vmem>>, %arg3: memref<1x4x1xf32, #tpu.memory_space<vmem>>, %arg4: memref<1x4x1xf32, #tpu.memory_space<vmem>>, %arg5: memref<1x4x256xf32, #tpu.memory_space<vmem>>) attributes {dimension_semantics = [#tpu.dimension_semantics<parallel>, #tpu.dimension_semantics<parallel>], iteration_bounds = array<i64: 2, 1>, scalar_prefetch = 0 : i64, scratch_operands = 0 : i64, tpu.core_type = #tpu.core_type<tc>, window_params = [{transform_indices = @transform_0, window_bounds = array<i64: 1, 4, 256>}, {pipeline_mode = #tpu.pipeline_mode<synchronous>, transform_indices = @transform_1, window_bounds = array<i64: 1, 4, 1>}, {pipeline_mode = #tpu.pipeline_mode<synchronous>, transform_indices = @transform_2, window_bounds = array<i64: 1, 4, 1>}, {transform_indices = @transform_3, window_bounds = array<i64: 1, 4, 256>}]} {
    %c0 = arith.constant 0 : index
    %c0_0 = arith.constant 0 : index
    %c0_1 = arith.constant 0 : index
    %0 = vector.load %arg2[%c0, %c0_0, %c0_1] : memref<1x4x256xf32, #tpu.memory_space<vmem>>, vector<1x4x256xf32>
    %cst = arith.constant dense<0.000000e+00> : vector<1x256xf32>
    %1 = vector.multi_reduction <add>, %0, %cst [1] : vector<1x4x256xf32> to vector<1x256xf32>
    %2 = vector.shape_cast %1 : vector<1x256xf32> to vector<1x1x256xf32>
    %cst_2 = arith.constant 4.000000e+00 : f32
    %3 = vector.broadcast %cst_2 : f32 to vector<1x1x256xf32>
    %4 = arith.divf %2, %3 : vector<1x1x256xf32>
    %5 = vector.broadcast %4 : vector<1x1x256xf32> to vector<1x4x256xf32>
    %6 = arith.subf %0, %5 : vector<1x4x256xf32>
    %7 = arith.mulf %6, %6 : vector<1x4x256xf32>
    %cst_3 = arith.constant dense<0.000000e+00> : vector<1x256xf32>
    %8 = vector.multi_reduction <add>, %7, %cst_3 [1] : vector<1x4x256xf32> to vector<1x256xf32>
    %9 = vector.shape_cast %8 : vector<1x256xf32> to vector<1x1x256xf32>
    %cst_4 = arith.constant 4.000000e+00 : f32
    %10 = vector.broadcast %cst_4 : f32 to vector<1x1x256xf32>
    %11 = arith.divf %9, %10 : vector<1x1x256xf32>
    %cst_5 = arith.constant 9.99999974E-6 : f32
    %12 = vector.broadcast %cst_5 : f32 to vector<1x1x256xf32>
    %13 = arith.addf %11, %12 : vector<1x1x256xf32>
    %14 = math.rsqrt %13 : vector<1x1x256xf32>
    %15 = vector.broadcast %14 : vector<1x1x256xf32> to vector<1x4x256xf32>
    %16 = arith.mulf %6, %15 : vector<1x4x256xf32>
    %c0_6 = arith.constant 0 : index
    %c0_7 = arith.constant 0 : index
    %c0_8 = arith.constant 0 : index
    %17 = vector.load %arg3[%c0_6, %c0_7, %c0_8] : memref<1x4x1xf32, #tpu.memory_space<vmem>>, vector<1x4x1xf32>
    %c0_9 = arith.constant 0 : index
    %c0_10 = arith.constant 0 : index
    %c0_11 = arith.constant 0 : index
    %18 = vector.load %arg4[%c0_9, %c0_10, %c0_11] : memref<1x4x1xf32, #tpu.memory_space<vmem>>, vector<1x4x1xf32>
    %19 = vector.broadcast %17 : vector<1x4x1xf32> to vector<1x4x256xf32>
    %20 = arith.mulf %16, %19 : vector<1x4x256xf32>
    %21 = vector.broadcast %18 : vector<1x4x1xf32> to vector<1x4x256xf32>
    %22 = arith.addf %20, %21 : vector<1x4x256xf32>
    %c0_12 = arith.constant 0 : index
    %c0_13 = arith.constant 0 : index
    %c0_14 = arith.constant 0 : index
    %23 = vector.load %arg5[%c0_12, %c0_13, %c0_14] : memref<1x4x256xf32, #tpu.memory_space<vmem>>, vector<1x4x256xf32>
    tpu.vector_store %arg5[%c0_12, %c0_13, %c0_14], %22 {strides = array<i32>} : memref<1x4x256xf32, #tpu.memory_space<vmem>>, vector<1x4x256xf32>,
    return
  }
  func.func @transform_0(%arg0: i32, %arg1: i32) -> (i32, i32, i32) {
    %c0_i32 = arith.constant 0 : i32
    %c0_i32_0 = arith.constant 0 : i32
    return %arg0, %c0_i32, %arg1 : i32, i32, i32
  }
  func.func @transform_1(%arg0: i32, %arg1: i32) -> (i32, i32, i32) {
    %c0_i32 = arith.constant 0 : i32
    %c0_i32_0 = arith.constant 0 : i32
    %c0_i32_1 = arith.constant 0 : i32
    %c0_i32_2 = arith.constant 0 : i32
    return %c0_i32, %c0_i32_0, %c0_i32_1 : i32, i32, i32
  }
  func.func @transform_2(%arg0: i32, %arg1: i32) -> (i32, i32, i32) {
    %c0_i32 = arith.constant 0 : i32
    %c0_i32_0 = arith.constant 0 : i32
    %c0_i32_1 = arith.constant 0 : i32
    %c0_i32_2 = arith.constant 0 : i32
    return %c0_i32, %c0_i32_0, %c0_i32_1 : i32, i32, i32
  }
  func.func @transform_3(%arg0: i32, %arg1: i32) -> (i32, i32, i32) {
    %c0_i32 = arith.constant 0 : i32
    %c0_i32_0 = arith.constant 0 : i32
    return %arg0, %c0_i32, %arg1 : i32, i32, i32
  }
}

</mosaic_0001>

<bundles_post_ra>
// kernel: layernorm.1
= control target key start
LH: loop header
LB: loop body
LE: loop exit
PB: predicated region body
PF: predicated region fallthrough
CT: control target
= control target key end

     0   :  { %s473_s12 = smov 0   ;;  %s475_s13 = smov 0   ;;  %s523_s0 = inlined_call_operand.vmem [shape: f32[2,4,256], index: 0, kind: input, shape index: {}]   ;;  %s524_s1 = inlined_call_operand.vmem [shape: f32[1,4,1], index: 1, kind: input, shape index: {}]   ;;  %s525_s2 = inlined_call_operand.vmem [shape: f32[1,4,1], index: 2, kind: input, shape index: {}]   ;;  %s526_s3 = inlined_call_operand.vmem [shape: f32[2,4,256], index: 3, kind: output, shape index: {}]  }
   0x1   :  { %s477_s14 = smov 0  }
   0x2 LB: > { %s25_s15 = sadd.s32 1, %s445_s13  ;;  %p386_p0 = scmp.ge.s32.totalorder %s449_s14, 1  ;;  %s449_s14 = sphi %s477_s14, %s13_s14   ;;  %s445_s13 = sphi %s475_s13, %s528_s13   ;;  %s441_s12 = sphi %s473_s12, %s527_s12  }
   0x3   : > { %p27_p1 = scmp.ge.s32.totalorder %s25_s15, 2  ;;  %p158_p2 = scmp.lt.s32.totalorder %s449_s14, 3 }
   0x5   : > { %s530_s15 = smov (%p27_p1, %s25_s15), 0  ;;  %p159_p3 = pnand %p386_p0, %p158_p2 }
   0x6   : > { %p191_p4 = scmp.lt.s32.totalorder (!%p159_p3), %s441_s12, 1 }
   0x7   : > { %162 = sbr.rel (%p159_p3) target bundleno = 147 (0x93), region = 32 }
   0xc   : > { %v266_v0 = vld [vmem:[%s524_s1] sm:$0xf]  ;;  %v451_v1 = vmov 0   ;;  %s532_s12 = smov (!%p191_p4, %s441_s12), 1  ;;  %vm214_vm0 = vcmask 1043456   ;;  %v275_v45 = vlaneseq }
   0xd   : > { %421 = vset.pattern.permute.xlu0 %v451_v1  ;;  %v267_v2 = vld [vmem:[%s525_s2] sm:$0xf]  ;;  %s393_s20 = sshll.u32 %s532_s12, 3  ;;  %v452_v43 = vmov 839922192  }
   0xe   : > { %270 = vperm.xlu0 %421, %v266_v0   ;;  %s198_s23 = scalar_lea.vmem %s523_s0, %s393_s20  ;;  %v273_v44 = vunpack.c.l.s4 %v452_v43  ;;  %v276_v48 = vshrl.u32 %v275_v45, 7  ;;  %s208_s26 = scalar_lea.vmem %s526_s3, %s393_s20 }
   0xf   : > { %v210_v3 = vld [vmem:[%s198_s23] sm:$0xff] }
  0x10   : > { %v212_v4 = vcombine.high %v210_v3, %v210_v3  ;;  %v215_v5 = vsel %vm214_vm0, %v210_v3, 0.0  ;;  %v274_v47 = vunpack.c.0.s8 %v273_v44 }
  0x11   : > { %v216_v7 = vrot.slane %v215_v5, 4 }
  0x12   : > { %283 = vperm.xlu0 %421, %v267_v2   ;;  %v222_v6 = vsel %vm214_vm0, %v212_v4, 0.0  ;;  %v277_v50 = vsub.s32 %v274_v47, %v276_v48 }
  0x13   : > { %v223_v8 = vrot.slane %v222_v6, 4  ;;  %v217_v9 = vadd.f32 %v216_v7, %v215_v5 }
  0x15   : > { %v224_v10 = vadd.f32 %v223_v8, %v222_v6  ;;  %v218_v11 = vrot.slane %v217_v9, 2 }
  0x17   : > { %v225_v12 = vrot.slane %v224_v10, 2  ;;  %v219_v13 = vadd.f32 %v218_v11, %v217_v9 }
  0x19   : > { %v226_v14 = vadd.f32 %v225_v12, %v224_v10  ;;  %v220_v15 = vrot.slane %v219_v13, 1 }
  0x1b   : > { %v227_v16 = vrot.slane %v226_v14, 1  ;;  %v221_v17 = vadd.f32 %v220_v15, %v219_v13 }
  0x1d   : > { %v228_v18 = vadd.f32 %v227_v16, %v226_v14  ;;  %v230_v19 = vmul.f32 0.25, %v221_v17 }
  0x1f   : > { %v231_v20 = vmul.f32 0.25, %v228_v18 }
  0x21   : > { %v234_v21 = vcombine.low %v230_v19, %v231_v20 }
  0x23   : > { %v236_v22 = vsub.f32 %v210_v3, %v234_v21 }
  0x25   : > { %v237_v23 = vmul.f32 %v236_v22, %v236_v22 }
  0x27   : > { %v239_v24 = vcombine.high %v237_v23, %v237_v23  ;;  %v241_v25 = vsel %vm214_vm0, %v237_v23, 0.0 }
  0x28   : > { %v242_v27 = vrot.slane %v241_v25, 4 }
  0x29   : > { %v248_v26 = vsel %vm214_vm0, %v239_v24, 0.0 }
  0x2a   : > { %v249_v28 = vrot.slane %v248_v26, 4  ;;  %v243_v29 = vadd.f32 %v242_v27, %v241_v25 }
  0x2c   : > { %v250_v30 = vadd.f32 %v249_v28, %v248_v26  ;;  %v244_v31 = vrot.slane %v243_v29, 2 }
  0x2e   : > { %v251_v32 = vrot.slane %v250_v30, 2  ;;  %v245_v33 = vadd.f32 %v244_v31, %v243_v29 }
  0x30   : > { %v252_v34 = vadd.f32 %v251_v32, %v250_v30  ;;  %v246_v35 = vrot.slane %v245_v33, 1 }
  0x32   : > { %v253_v36 = vrot.slane %v252_v34, 1  ;;  %v247_v37 = vadd.f32 %v246_v35, %v245_v33 }
  0x34   : > { %v254_v38 = vadd.f32 %v253_v36, %v252_v34  ;;  %v255_v39 = vmul.f32 0.25, %v247_v37 }
  0x36   : > { %v256_v40 = vmul.f32 0.25, %v254_v38  ;;  %v257_v41 = vadd.f32 1e-05, %v255_v39 }
  0x38   : > { %v258_v42 = vadd.f32 1e-05, %v256_v40  ;;  %423 = vrsqrt.f32 %v257_v41 }
  0x3a   : > { %425 = vrsqrt.f32 %v258_v42 }
  0x45   : > { %v424_v46 = vpop.eup %423 }
  0x47   : > { %v426_v49 = vpop.eup %425 }
  0x48   : > { %v263_v51 = vcombine.low %v424_v46, %v426_v49 }
  0x4a   : > { %v265_v53 = vmul.f32 %v263_v51, %v236_v22 }
  0x89   : > { %v271_v52 = vpop.permute.xlu0 %270 }
  0x8a   : > { %v278_v54 = vrot.slane %v271_v52, %v277_v50 }
  0x8c   : > { %v280_v56 = vmul.f32 %v278_v54, %v265_v53 }
  0x8d   : > { %v284_v55 = vpop.permute.xlu0 %283 }
  0x8e   : > { %v291_v57 = vrot.slane %v284_v55, %v277_v50 }
  0x90   : > { %v293_v58 = vadd.f32 %v291_v57, %v280_v56 }
  0x92   : > { %294 = vst [vmem:[%s208_s26] sm:$0xff] %v293_v58 }
  0x93 PF: > { %s13_s14 = sadd.s32 1, %s449_s14   ;;  %s527_s12 = smov %s445_s13 }
  0x94   : > { %p10_p5 = scmp.ge.s32.totalorder %s13_s14, 4   ;;  %s528_s13 = smov %s530_s15 }
  0x96   :  { %12 = sbr.rel (!%p10_p5) target bundleno = 2 (0x2), region = 62 }

</bundles_post_ra>
